<compile_context>
chip_gen: v5e
topology: v5e:2x2
jax: 0.10.0
libtpu: 0.0.40
codegen_flags: <defaults>
</compile_context>

<pallas_src>
import functools

import jax
import jax.numpy as jnp
from jax.experimental import pallas as pl
from jax.experimental.pallas import tpu as pltpu


def _round_up(n, m):
    return ((n + m - 1) // m) * m


def _cdiv(a, b):
    return -(-a // b)


def gearnet_kernel(x_ref, w1_ref, b1_ref, w2_ref, b2_ref, w3_ref, b3_ref, o_ref):
    # x arrives as f32 (single 4 B/elem HBM read); cast to bf16 on the VPU just
    # before feeding the MXU.  All matmuls accumulate in f32.
    x = x_ref[...].astype(jnp.bfloat16)                                 # [tb, in]

    h1 = jnp.dot(x, w1_ref[...], preferred_element_type=jnp.float32)   # [tb, 128]
    h1 = jnp.maximum(h1 + b1_ref[...], 0.0)

    h2 = jnp.dot(h1.astype(jnp.bfloat16), w2_ref[...],
                 preferred_element_type=jnp.float32)                    # [tb, 64]
    h2 = jnp.maximum(h2 + b2_ref[...], 0.0)

    out = jnp.dot(h2.astype(jnp.bfloat16), w3_ref[...],
                  preferred_element_type=jnp.float32) + b3_ref[...]     # [tb, n_gears]
    o_ref[...] = out.astype(o_ref.dtype)


def prepare_gearnet_params(params):
    """One-time conversion outside the per-call jit: weights -> bf16 [in,out],
    biases -> f32 [1,out]."""
    return {
        "w1": params["w1"].astype(jnp.bfloat16),
        "w2": params["w2"].astype(jnp.bfloat16),
        "w3": params["w3"].astype(jnp.bfloat16),
        "b1": params["b1"].astype(jnp.float32),
        "b2": params["b2"].astype(jnp.float32),
        "b3": params["b3"].astype(jnp.float32),
    }


@functools.partial(jax.jit, static_argnames=("max_tile_b",))
def gearnet_forward(x, prepared, *, max_tile_b=512):
    """x: [B, input_size] float32. prepared: output of prepare_gearnet_params."""
    B, in_dim = x.shape
    w1, b1 = prepared["w1"], prepared["b1"]          # [in,128] bf16, [1,128] f32
    w2, b2 = prepared["w2"], prepared["b2"]          # [128,64], [1,64]
    w3, b3 = prepared["w3"], prepared["b3"]          # [64,n_gears], [1,n_gears]
    h1_dim, h2_dim = w1.shape[1], w2.shape[1]
    n_gears = w3.shape[1]

    # Adaptive tile: tiny batches -> single step at the 8-row granule; large batches
    # -> up to max_tile_b rows per step, balanced so padding waste stays small and
    # the grid has >= 2 steps (both TensorCores on v7x).
    B8 = _round_up(B, 8)
    if B8 <= max_tile_b:
        tile_b = B8
    else:
        n_tiles = _cdiv(B8, max_tile_b)
        tile_b = _round_up(_cdiv(B8, n_tiles), 8)
    B_pad = _round_up(B, tile_b)
    x_p = jnp.pad(x, ((0, B_pad - B), (0, 0))) if B_pad != B else x

    grid = (B_pad // tile_b,)

    flops = 2 * B_pad * (in_dim * h1_dim + h1_dim * h2_dim + h2_dim * n_gears)
    bytes_accessed = (
        B_pad * in_dim * 4                            # x (f32)
        + (w1.size + w2.size + w3.size) * 2           # bf16 weights
        + (b1.size + b2.size + b3.size) * 4           # f32 biases
        + B_pad * n_gears * 4                         # output (narrow, f32)
    )

    vmem_bytes = (
        2 * tile_b * in_dim * 4                       # double-buffered x tile
        + 2 * tile_b * n_gears * 4                    # double-buffered out tile
        + (w1.size + w2.size + w3.size) * 2           # resident weights (single buffer)
        + (b1.size + b2.size + b3.size) * 4           # resident biases
        + tile_b * (h1_dim + h2_dim) * 8              # intermediate activations headroom
    )
    vmem_limit = int(min(max(2 * vmem_bytes, 16 * 1024 * 1024), 60 * 1024 * 1024))

    resident = pl.Buffered(1)   # constant index_map: no need for a second buffer

    out = pl.pallas_call(
        gearnet_kernel,
        out_shape=jax.ShapeDtypeStruct((B_pad, n_gears), jnp.float32),
        grid_spec=pltpu.PrefetchScalarGridSpec(
            num_scalar_prefetch=0,
            grid=grid,
            in_specs=[
                pl.BlockSpec((tile_b, in_dim), lambda i: (i, 0)),                # x tile (f32)
                pl.BlockSpec(w1.shape, lambda i: (0, 0), pipeline_mode=resident),
                pl.BlockSpec(b1.shape, lambda i: (0, 0), pipeline_mode=resident),
                pl.BlockSpec(w2.shape, lambda i: (0, 0), pipeline_mode=resident),
                pl.BlockSpec(b2.shape, lambda i: (0, 0), pipeline_mode=resident),
                pl.BlockSpec(w3.shape, lambda i: (0, 0), pipeline_mode=resident),
                pl.BlockSpec(b3.shape, lambda i: (0, 0), pipeline_mode=resident),
            ],
            out_specs=pl.BlockSpec((tile_b, n_gears), lambda i: (i, 0)),         # narrow output
        ),
        compiler_params=pltpu.CompilerParams(
            dimension_semantics=("parallel",),        # batch tiles shard across TCs on v7x
            vmem_limit_bytes=vmem_limit,
        ),
        cost_estimate=pl.CostEstimate(
            flops=flops, transcendentals=0, bytes_accessed=bytes_accessed
        ),
    )(x_p, w1, b1, w2, b2, w3, b3)

    return out[:B]


def init_gearnet_params(key, input_size, n_gears=8):
    """PyTorch nn.Linear-style init ([out,in] weights, uniform +-1/sqrt(fan_in)),
    transposed to [in,out] for the kernel. All f32; bf16 cast happens in prepare."""
    k1, k2, k3, k4, k5, k6 = jax.random.split(key, 6)

    def linear(kw, kb, fan_in, fan_out):
        bound = 1.0 / jnp.sqrt(fan_in)
        w = jax.random.uniform(kw, (fan_out, fan_in), jnp.float32, -bound, bound)
        b = jax.random.uniform(kb, (fan_out,), jnp.float32, -bound, bound)
        return w.T, b.reshape(1, fan_out)

    w1, b1 = linear(k1, k2, input_size, 128)
    w2, b2 = linear(k3, k4, 128, 64)
    w3, b3 = linear(k5, k6, 64, n_gears)
    return {"w1": w1, "b1": b1, "w2": w2, "b2": b2, "w3": w3, "b3": b3}


def gearnet_reference(x, params):
    """Reference with the same bf16-rounded matmul inputs (f32 accumulation), so
    only the kernel-internal bf16 round-trips differ."""
    cd = jnp.bfloat16
    xr = x.astype(cd).astype(jnp.float32)
    w1 = params["w1"].astype(cd).astype(jnp.float32)
    w2 = params["w2"].astype(cd).astype(jnp.float32)
    w3 = params["w3"].astype(cd).astype(jnp.float32)
    h1 = jnp.maximum(xr @ w1 + params["b1"], 0.0)
    h2 = jnp.maximum(h1 @ w2 + params["b2"], 0.0)
    return h2 @ w3 + params["b3"]


if __name__ == "__main__":
    key = jax.random.PRNGKey(0)
    k_param, k_x = jax.random.split(key)

    batch = 16
    input_size = 32
    n_gears = 8

    params = init_gearnet_params(k_param, input_size, n_gears)
    prepared = prepare_gearnet_params(params)
    x = jax.random.normal(k_x, (batch, input_size), jnp.float32)

    out = gearnet_forward(x, prepared, max_tile_b=512)
    out = jax.block_until_ready(out)

    ref = gearnet_reference(x, params)
    assert out.shape == (batch, n_gears), out.shape
    assert jnp.allclose(out, ref, atol=2e-2, rtol=2e-2), "mismatch vs reference"

    print("KERNEL_OK")
</pallas_src>

<mosaic_0001>
module attributes {stable_mosaic.version = 11 : i64} {
  func.func @gearnet_kernel(%arg0: i32, %arg1: memref<16x32xf32, #tpu.memory_space<vmem>>, %arg2: memref<32x128xbf16, #tpu.memory_space<vmem>>, %arg3: memref<1x128xf32, #tpu.memory_space<vmem>>, %arg4: memref<128x64xbf16, #tpu.memory_space<vmem>>, %arg5: memref<1x64xf32, #tpu.memory_space<vmem>>, %arg6: memref<64x8xbf16, #tpu.memory_space<vmem>>, %arg7: memref<1x8xf32, #tpu.memory_space<vmem>>, %arg8: memref<16x8xf32, #tpu.memory_space<vmem>>) attributes {dimension_semantics = [#tpu.dimension_semantics<parallel>], iteration_bounds = array<i64: 1>, scalar_prefetch = 0 : i64, scratch_operands = 0 : i64, tpu.core_type = #tpu.core_type<tc>, window_params = [{transform_indices = @transform_0, window_bounds = array<i64: 16, 32>}, {pipeline_mode = #tpu.pipeline_mode<synchronous>, transform_indices = @transform_1, window_bounds = array<i64: 32, 128>}, {pipeline_mode = #tpu.pipeline_mode<synchronous>, transform_indices = @transform_2, window_bounds = array<i64: 1, 128>}, {pipeline_mode = #tpu.pipeline_mode<synchronous>, transform_indices = @transform_3, window_bounds = array<i64: 128, 64>}, {pipeline_mode = #tpu.pipeline_mode<synchronous>, transform_indices = @transform_4, window_bounds = array<i64: 1, 64>}, {pipeline_mode = #tpu.pipeline_mode<synchronous>, transform_indices = @transform_5, window_bounds = array<i64: 64, 8>}, {pipeline_mode = #tpu.pipeline_mode<synchronous>, transform_indices = @transform_6, window_bounds = array<i64: 1, 8>}, {transform_indices = @transform_7, window_bounds = array<i64: 16, 8>}]} {
    %c0 = arith.constant 0 : index
    %c0_0 = arith.constant 0 : index
    %0 = vector.load %arg1[%c0, %c0_0] : memref<16x32xf32, #tpu.memory_space<vmem>>, vector<16x32xf32>
    %1 = arith.truncf %0 : vector<16x32xf32> to vector<16x32xbf16>
    %c0_1 = arith.constant 0 : index
    %c0_2 = arith.constant 0 : index
    %2 = vector.load %arg2[%c0_1, %c0_2] : memref<32x128xbf16, #tpu.memory_space<vmem>>, vector<32x128xbf16>
    %cst = arith.constant dense<0.000000e+00> : vector<16x128xf32>
    %3 = tpu.matmul %1, %2, %cst {dimension_numbers = #tpu.dot_dimension_numbers<[1], [0], [0], [1], [0, 0, 1, 1], [], []>} : vector<16x32xbf16>, vector<32x128xbf16>, vector<16x128xf32> -> vector<16x128xf32>
    %c0_3 = arith.constant 0 : index
    %c0_4 = arith.constant 0 : index
    %4 = vector.load %arg3[%c0_3, %c0_4] : memref<1x128xf32, #tpu.memory_space<vmem>>, vector<1x128xf32>
    %5 = vector.broadcast %4 : vector<1x128xf32> to vector<16x128xf32>
    %6 = arith.addf %3, %5 : vector<16x128xf32>
    %cst_5 = arith.constant 0.000000e+00 : f32
    %7 = vector.broadcast %cst_5 : f32 to vector<16x128xf32>
    %8 = arith.maximumf %6, %7 : vector<16x128xf32>
    %9 = arith.truncf %8 : vector<16x128xf32> to vector<16x128xbf16>
    %c0_6 = arith.constant 0 : index
    %c0_7 = arith.constant 0 : index
    %10 = vector.load %arg4[%c0_6, %c0_7] : memref<128x64xbf16, #tpu.memory_space<vmem>>, vector<128x64xbf16>
    %cst_8 = arith.constant dense<0.000000e+00> : vector<16x64xf32>
    %11 = tpu.matmul %9, %10, %cst_8 {dimension_numbers = #tpu.dot_dimension_numbers<[1], [0], [0], [1], [0, 0, 1, 1], [], []>} : vector<16x128xbf16>, vector<128x64xbf16>, vector<16x64xf32> -> vector<16x64xf32>
    %c0_9 = arith.constant 0 : index
    %c0_10 = arith.constant 0 : index
    %12 = vector.load %arg5[%c0_9, %c0_10] : memref<1x64xf32, #tpu.memory_space<vmem>>, vector<1x64xf32>
    %13 = vector.broadcast %12 : vector<1x64xf32> to vector<16x64xf32>
    %14 = arith.addf %11, %13 : vector<16x64xf32>
    %cst_11 = arith.constant 0.000000e+00 : f32
    %15 = vector.broadcast %cst_11 : f32 to vector<16x64xf32>
    %16 = arith.maximumf %14, %15 : vector<16x64xf32>
    %17 = arith.truncf %16 : vector<16x64xf32> to vector<16x64xbf16>
    %c0_12 = arith.constant 0 : index
    %c0_13 = arith.constant 0 : index
    %18 = vector.load %arg6[%c0_12, %c0_13] : memref<64x8xbf16, #tpu.memory_space<vmem>>, vector<64x8xbf16>
    %cst_14 = arith.constant dense<0.000000e+00> : vector<16x8xf32>
    %19 = tpu.matmul %17, %18, %cst_14 {dimension_numbers = #tpu.dot_dimension_numbers<[1], [0], [0], [1], [0, 0, 1, 1], [], []>} : vector<16x64xbf16>, vector<64x8xbf16>, vector<16x8xf32> -> vector<16x8xf32>
    %c0_15 = arith.constant 0 : index
    %c0_16 = arith.constant 0 : index
    %20 = vector.load %arg7[%c0_15, %c0_16] : memref<1x8xf32, #tpu.memory_space<vmem>>, vector<1x8xf32>
    %21 = vector.broadcast %20 : vector<1x8xf32> to vector<16x8xf32>
    %22 = arith.addf %19, %21 : vector<16x8xf32>
    %c0_17 = arith.constant 0 : index
    %c0_18 = arith.constant 0 : index
    %23 = vector.load %arg8[%c0_17, %c0_18] : memref<16x8xf32, #tpu.memory_space<vmem>>, vector<16x8xf32>
    tpu.vector_store %arg8[%c0_17, %c0_18], %22 {strides = array<i32>} : memref<16x8xf32, #tpu.memory_space<vmem>>, vector<16x8xf32>,
    return
  }
  func.func @transform_0(%arg0: i32) -> (i32, i32) {
    %c0_i32 = arith.constant 0 : i32
    %c0_i32_0 = arith.constant 0 : i32
    return %arg0, %c0_i32 : i32, i32
  }
  func.func @transform_1(%arg0: i32) -> (i32, i32) {
    %c0_i32 = arith.constant 0 : i32
    %c0_i32_0 = arith.constant 0 : i32
    %c0_i32_1 = arith.constant 0 : i32
    return %c0_i32, %c0_i32_0 : i32, i32
  }
  func.func @transform_2(%arg0: i32) -> (i32, i32) {
    %c0_i32 = arith.constant 0 : i32
    %c0_i32_0 = arith.constant 0 : i32
    %c0_i32_1 = arith.constant 0 : i32
    return %c0_i32, %c0_i32_0 : i32, i32
  }
  func.func @transform_3(%arg0: i32) -> (i32, i32) {
    %c0_i32 = arith.constant 0 : i32
    %c0_i32_0 = arith.constant 0 : i32
    %c0_i32_1 = arith.constant 0 : i32
    return %c0_i32, %c0_i32_0 : i32, i32
  }
  func.func @transform_4(%arg0: i32) -> (i32, i32) {
    %c0_i32 = arith.constant 0 : i32
    %c0_i32_0 = arith.constant 0 : i32
    %c0_i32_1 = arith.constant 0 : i32
    return %c0_i32, %c0_i32_0 : i32, i32
  }
  func.func @transform_5(%arg0: i32) -> (i32, i32) {
    %c0_i32 = arith.constant 0 : i32
    %c0_i32_0 = arith.constant 0 : i32
    %c0_i32_1 = arith.constant 0 : i32
    return %c0_i32, %c0_i32_0 : i32, i32
  }
  func.func @transform_6(%arg0: i32) -> (i32, i32) {
    %c0_i32 = arith.constant 0 : i32
    %c0_i32_0 = arith.constant 0 : i32
    %c0_i32_1 = arith.constant 0 : i32
    return %c0_i32, %c0_i32_0 : i32, i32
  }
  func.func @transform_7(%arg0: i32) -> (i32, i32) {
    %c0_i32 = arith.constant 0 : i32
    %c0_i32_0 = arith.constant 0 : i32
    return %arg0, %c0_i32 : i32, i32
  }
}

</mosaic_0001>

<bundles_post_ra>
// kernel: gearnet_forward.1
= control target key start
LH: loop header
LB: loop body
LE: loop exit
PB: predicated region body
PF: predicated region fallthrough
CT: control target
= control target key end

     0   :  { %vm50_vm0 = vcmask 261120   ;;  %vm192_vm1 = vcmask 523264   ;;  %vm210_vm2 = vcmask 64512   ;;  %s395_s1 = inlined_call_operand.vmem [shape: bf16[32,128], index: 1, kind: input, shape index: {}]   ;;  %s396_s0 = inlined_call_operand.vmem [shape: f32[16,32], index: 0, kind: input, shape index: {}]   ;;  %s397_s3 = inlined_call_operand.vmem [shape: bf16[128,64], index: 3, kind: input, shape index: {}]   ;;  %s398_s2 = inlined_call_operand.vmem [shape: f32[1,128], index: 2, kind: input, shape index: {}]   ;;  %s399_s4 = inlined_call_operand.vmem [shape: f32[1,64], index: 4, kind: input, shape index: {}]   ;;  %s400_s6 = inlined_call_operand.vmem [shape: f32[1,8], index: 6, kind: input, shape index: {}]   ;;  %s401_s5 = inlined_call_operand.vmem [shape: bf16[64,8], index: 5, kind: input, shape index: {}]   ;;  %s402_s7 = inlined_call_operand.vmem [shape: f32[16,8], index: 7, kind: output, shape index: {}]  }
   0x1   :  { %v276_v0 = vld [vmem:[%s395_s1 + $0x8] sm:$0xff]  ;;  %v275_v1 = vld [vmem:[%s395_s1] sm:$0xff]  ;;  %v284_v2 = vld [vmem:[%s397_s3 + $0x38] sm:$0xff] }
   0x2   :  { %60 = vmatpush.bf16.msra.mxu0 %v276_v0  ;;  %v27_v3 = vld [vmem:[%s396_s0] sm:$0xff]  ;;  %v28_v4 = vld [vmem:[%s396_s0 + $0x8] sm:$0xff]  ;;  %139 = vmatpush.bf16.msra.mxu1 %v284_v2  ;;  %v283_v5 = vld [vmem:[%s397_s3 + $0x30] sm:$0xff] }
   0x3   :  { %v29_v6 = vpack.c.bf16 %v28_v4, %v27_v3  ;;  %v282_v7 = vld [vmem:[%s397_s3 + $0x28] sm:$0xff]  ;;  %v281_v8 = vld [vmem:[%s397_s3 + $0x20] sm:$0xff]  ;;  %v280_v9 = vld [vmem:[%s397_s3 + $0x18] sm:$0xff] }
   0x4   :  { %v279_v10 = vld [vmem:[%s397_s3 + $0x10] sm:$0xff]  ;;  %v278_v11 = vld [vmem:[%s397_s3 + $0x8] sm:$0xff]  ;;  %v277_v12 = vld [vmem:[%s397_s3] sm:$0xff] }
   0x5   :  { %v289_v14 = vld [vmem:[%s398_s2] ss:$0 sm:$0xff]  ;;  %v288_v21 = vld [vmem:[%s401_s5 + $0x18] sm:$0xff]  ;;  %v287_v22 = vld [vmem:[%s401_s5 + $0x10] sm:$0xff] }
   0x6   :  { %61 = vmatpush.bf16.msra.mxu0 %v275_v1  ;;  %140 = vmatpush.bf16.msra.mxu1 %v283_v5  ;;  %v286_v23 = vld [vmem:[%s401_s5 + $0x8] sm:$0xff]  ;;  %v285_v24 = vld [vmem:[%s401_s5] sm:$0xff] }
   0x7   :  { %200 = vmatpush.bf16.msra.mxu2 %v288_v21  ;;  %v290_v26 = vld [vmem:[%s399_s4] ss:$0 sm:$0xff] }
   0x8   :  { %v291_v33 = vld [vmem:[%s400_s6] ss:$0 sm:$0xff] }
   0x9   :  { %225 = vmatmul.msk.bf16.vlgmr.msra.gmra.mxu0 %vm50_vm0, %v29_v6 }
   0xa   :  { %141 = vmatpush.bf16.msra.mxu1 %v282_v7 }
   0xb   :  { %201 = vmatpush.bf16.msra.mxu2 %v287_v22 }
   0xe   :  { %142 = vmatpush.bf16.msra.mxu1 %v281_v8 }
   0xf   :  { %202 = vmatpush.bf16.msra.mxu2 %v286_v23 }
  0x12   :  { %143 = vmatpush.bf16.msra.mxu1 %v280_v9 }
  0x13   :  { %203 = vmatpush.bf16.msra.mxu2 %v285_v24 }
  0x16   :  { %144 = vmatpush.bf16.msra.mxu1 %v279_v10 }
  0x1a   :  { %145 = vmatpush.bf16.msra.mxu1 %v278_v11 }
  0x1e   :  { %146 = vmatpush.bf16.msra.mxu1 %v277_v12 }
  0x86   :  { %v63_v13 = vpop.f32.mrf.mxu0 }
  0x87   :  { %v64_v15 = vadd.f32 %v289_v14, %v63_v13 }
  0x89   :  { %v68_v18 = vmax.f32 %v64_v15, 0.0 }
  0x8e   :  { %v65_v16 = vpop.f32.mrf.mxu0 }
  0x8f   :  { %v66_v17 = vadd.f32 %v289_v14, %v65_v16 }
  0x91   :  { %v69_v19 = vmax.f32 %v66_v17, 0.0 }
  0x93   :  { %v70_v20 = vpack.c.bf16 %v69_v19, %v68_v18 }
  0x95   :  { %147 = vmatmul.bf16.vlgmr.msra.gmra.mxu1 %v70_v20 }
 0x112   :  { %v148_v25 = vpop.f32.mrf.mxu1 }
 0x113   :  { %v149_v27 = vadd.f32 %v290_v26, %v148_v25 }
 0x115   :  { %v153_v30 = vmax.f32 %v149_v27, 0.0 }
 0x11a   :  { %v150_v28 = vpop.f32.mrf.mxu1 }
 0x11b   :  { %v151_v29 = vadd.f32 %v290_v26, %v150_v28 }
 0x11d   :  { %v154_v31 = vmax.f32 %v151_v29, 0.0 }
 0x11f   :  { %v155_v32 = vpack.c.bf16 %v154_v31, %v153_v30 }
 0x121   :  { %274 = vmatmul.msk.bf16.vlgmr.msra.gmra.mxu2 %vm192_vm1, %v155_v32 }
 0x1a4   :  { %v205_v34 = vpop.f32.mrf.mxu2 }
 0x1a5   :  { %v206_v35 = vadd.f32 %v291_v33, %v205_v34 }
 0x1a7   :  { %211 = vst.msk [vmem:[%s402_s7] sm:$0xff] %vm210_vm2, %v206_v35 }
 0x1ac   :  { %v207_v36 = vpop.f32.mrf.mxu2 }
 0x1ad   :  { %v208_v37 = vadd.f32 %v291_v33, %v207_v36 }
 0x1af   :  { %212 = vst.msk [vmem:[%s402_s7 + $0x8] sm:$0xff] %vm210_vm2, %v208_v37 }

</bundles_post_ra>
